<compile_context>
chip_gen: v6e
topology: v6e:2x2x1
jax: 0.10.0
libtpu: 0.0.40
codegen_flags: <defaults>
</compile_context>

<pallas_src>
import math

import jax
import jax.numpy as jnp
from jax.experimental import pallas as pl
from jax.experimental.pallas import tpu as pltpu


# ---------------------------------------------------------------------------
# Kernels: elementwise affine transform on a lane-dense [R, L] slab.
# mean / scale rows are [1, L] float32 and broadcast over the row (sublane)
# axis.  Compute is done in f32 regardless of the data dtype.
# ---------------------------------------------------------------------------
def _normalize_kernel(data_ref, mean_ref, inv_ref, out_ref):
    x = data_ref[...].astype(jnp.float32)
    out_ref[...] = ((x - mean_ref[...]) * inv_ref[...]).astype(out_ref.dtype)


def _denormalize_kernel(data_ref, mean_ref, scl_ref, out_ref):
    x = data_ref[...].astype(jnp.float32)
    out_ref[...] = (x * scl_ref[...] + mean_ref[...]).astype(out_ref.dtype)


# ---------------------------------------------------------------------------
# Pallas wrapper: row-tiled grid over a 2D slab.
# ---------------------------------------------------------------------------
_MIN_PALLAS_ELEMENTS = 1024    # below this, pallas_call/DMA overhead dominates
_MAX_LANE_WIDTH = 1024         # cap on the lane-dense repeat width (lcm(D,128))
_TARGET_TILE_BYTES = 512 * 1024  # ~512 KiB/tile -> ~2 MiB with double-buffered
                                 # in+out; safe on v7x (64 MiB VMEM, 32 MiB scoped)


def _rows_per_block(num_rows, lane_width, block_rows=None):
    if block_rows is None:
        block_rows = max(8, _TARGET_TILE_BYTES // (lane_width * 4))
        block_rows = (block_rows // 8) * 8
    if num_rows <= block_rows:
        return num_rows          # full-extent block: always a legal block shape
    return block_rows            # multiple of 8; Pallas masks the edge block


def _run_affine(kernel_fn, data2d, mean_row, scale_row, out_dtype,
                block_rows=None):
    """Elementwise affine over data2d [R, L] with [1, L] broadcast rows."""
    R, L = data2d.shape
    br = _rows_per_block(R, L, block_rows)
    grid = (pl.cdiv(R, br),)
    return pl.pallas_call(
        kernel_fn,
        out_shape=jax.ShapeDtypeStruct((R, L), out_dtype),
        grid=grid,
        in_specs=[
            pl.BlockSpec((br, L), lambda i: (i, 0)),
            pl.BlockSpec((1, L), lambda i: (0, 0)),
            pl.BlockSpec((1, L), lambda i: (0, 0)),
        ],
        out_specs=pl.BlockSpec((br, L), lambda i: (i, 0)),
        compiler_params=pltpu.CompilerParams(
            dimension_semantics=("parallel",)),
    )(data2d, mean_row, scale_row)


def _lane_dense_width(n_rows, n_feat):
    """Repeat width L (multiple of 128, period n_feat) if [N, D] can be viewed
    as [N*D/L, L] with no padding; otherwise None."""
    L = (n_feat * 128) // math.gcd(n_feat, 128)   # lcm(D, 128)
    if L > _MAX_LANE_WIDTH:
        return None
    if (n_rows * n_feat) % L != 0:
        return None
    return L


def _apply_affine(kernel_fn, data, mean_f, scale_f, *,
                  min_pallas_elements=_MIN_PALLAS_ELEMENTS, block_rows=None):
    """Dispatch: tiny -> fused jnp; else lane-dense Pallas; else row-tiled Pallas."""
    N, D = data.shape
    if N * D < min_pallas_elements:
        # Tiny inputs: let XLA fuse the broadcasted math into the graph.
        if kernel_fn is _normalize_kernel:
            out = (data.astype(jnp.float32) - mean_f) * scale_f
        else:
            out = data.astype(jnp.float32) * scale_f + mean_f
        return out.astype(data.dtype)

    L = _lane_dense_width(N, D)
    if L is not None:
        reps = L // D
        data2d = data.reshape((N * D) // L, L)          # free row-major reshape
        mean_row = jnp.tile(mean_f, reps).reshape(1, L)
        scale_row = jnp.tile(scale_f, reps).reshape(1, L)
        out = _run_affine(kernel_fn, data2d, mean_row, scale_row, data.dtype,
                          block_rows=block_rows)
        return out.reshape(N, D)

    # General fallback (awkward D / row counts): keep [N, D], tile over rows.
    return _run_affine(kernel_fn, data,
                       mean_f.reshape(1, D), scale_f.reshape(1, D),
                       data.dtype, block_rows=block_rows)


def scalar_normalize(data, mean, norm, scale=1.0, *,
                     min_pallas_elements=_MIN_PALLAS_ELEMENTS, block_rows=None):
    """out = (data - mean) / (norm * scale), per column."""
    mean_f = jnp.asarray(mean, jnp.float32)
    inv_f = 1.0 / (jnp.asarray(norm, jnp.float32) * jnp.float32(scale))
    return _apply_affine(_normalize_kernel, data, mean_f, inv_f,
                         min_pallas_elements=min_pallas_elements,
                         block_rows=block_rows)


def scalar_denormalize(data, mean, norm, scale=1.0, *,
                       min_pallas_elements=_MIN_PALLAS_ELEMENTS,
                       block_rows=None):
    """out = data * (norm * scale) + mean, per column."""
    mean_f = jnp.asarray(mean, jnp.float32)
    scl_f = jnp.asarray(norm, jnp.float32) * jnp.float32(scale)
    return _apply_affine(_denormalize_kernel, data, mean_f, scl_f,
                         min_pallas_elements=min_pallas_elements,
                         block_rows=block_rows)


# ---------------------------------------------------------------------------
# Module-level wrappers mirroring the PyTorch classes.
# ---------------------------------------------------------------------------
class ScalarNormalizePallas:
    """JAX/Pallas equivalent of ScalarNormalize (per-column affine normalize)."""

    def __init__(self, mean, norm, scale=1.0):
        self.mean = jnp.asarray(mean, jnp.float32)
        self.norm = jnp.asarray(norm, jnp.float32)
        self.scale = float(scale)

    def forward(self, data):
        return scalar_normalize(data, self.mean, self.norm, self.scale)

    __call__ = forward

    def inverse(self, data):
        return scalar_denormalize(data, self.mean, self.norm, self.scale)


class ScalarFeatureTransformPallas:
    """JAX/Pallas equivalent of ScalarFeatureTransform.forward.

    `statistics` plays the role of the dataset-statistics file:
    dict name -> {"mean": [size], "norm": [size]}.
    """

    def __init__(self, feature_names, feature_sizes, statistics):
        self.feature_names = list(feature_names)
        self.feature_sizes = list(feature_sizes)
        self.normalizers = {
            name: ScalarNormalizePallas(statistics[name]["mean"],
                                        statistics[name]["norm"])
            for name in self.feature_names
        }
        # TODO(synk): loading statistics from a torch file path
        # (dataset_statistics_path / _fill_state_dict) is host-side I/O with no
        # Pallas equivalent; statistics are passed in directly instead.

    def forward(self, x):
        """x: dict name -> [num_rows, size] array.  Returns normalized dict."""
        out = dict(x)
        for name in self.feature_names:
            out[name] = self.normalizers[name](x[name])
        return out

    def inverse(self, data, name):
        raise RuntimeError("This is supposed not to be called.")


# ---------------------------------------------------------------------------
# Self-test
# ---------------------------------------------------------------------------
if __name__ == "__main__":
    key = jax.random.PRNGKey(0)

    # Atom-like features (many rows) + a global crystal feature (one row).
    feature_names = ["atom_feat", "env_feat", "global_feat"]
    feature_sizes = [2, 5, 3]
    num_rows = {"atom_feat": 1024, "env_feat": 1000, "global_feat": 1}

    keys = jax.random.split(key, 2 * len(feature_names))
    x, stats = {}, {}
    for i, (name, size) in enumerate(zip(feature_names, feature_sizes)):
        kx, ks = keys[2 * i], keys[2 * i + 1]
        x[name] = 3.0 * jax.random.normal(kx, (num_rows[name], size),
                                          jnp.float32) + 1.5
        km, kn = jax.random.split(ks)
        stats[name] = {
            "mean": jax.random.normal(km, (size,), jnp.float32),
            "norm": 0.5 + jax.random.uniform(kn, (size,), jnp.float32),
        }

    xform = ScalarFeatureTransformPallas(feature_names, feature_sizes, stats)
    out = xform.forward(x)
    jax.tree_util.tree_map(jax.block_until_ready, out)

    ok = True
    for name in feature_names:
        mean, norm = stats[name]["mean"], stats[name]["norm"]
        ref = (x[name] - mean) / norm
        ok &= bool(jnp.allclose(out[name], ref, atol=1e-5, rtol=1e-5))
        # inverse roundtrip via the per-feature normalizer
        inv = jax.block_until_ready(xform.normalizers[name].inverse(out[name]))
        ok &= bool(jnp.allclose(inv, x[name], atol=1e-4, rtol=1e-4))

    # Exercise the multi-block pipelined grid explicitly (small block_rows).
    name = "atom_feat"
    out_grid = jax.block_until_ready(
        scalar_normalize(x[name], stats[name]["mean"], stats[name]["norm"],
                         block_rows=8))
    ref = (x[name] - stats[name]["mean"]) / stats[name]["norm"]
    ok &= bool(jnp.allclose(out_grid, ref, atol=1e-5, rtol=1e-5))

    # bf16 data path: kernel upcasts to f32, casts back on store.
    xb = x[name].astype(jnp.bfloat16)
    ob = jax.block_until_ready(
        scalar_normalize(xb, stats[name]["mean"], stats[name]["norm"]))
    refb = ((xb.astype(jnp.float32) - stats[name]["mean"])
            / stats[name]["norm"]).astype(jnp.bfloat16)
    ok &= bool(jnp.allclose(ob.astype(jnp.float32), refb.astype(jnp.float32),
                            atol=2e-2, rtol=2e-2))

    if ok:
        print("KERNEL_OK")
    else:
        raise SystemExit("mismatch vs reference")
</pallas_src>

<mosaic_0001>
module attributes {stable_mosaic.version = 11 : i64} {
  func.func @_normalize_kernel(%arg0: i32, %arg1: memref<16x128xf32, #tpu.memory_space<vmem>>, %arg2: memref<1x128xf32, #tpu.memory_space<vmem>>, %arg3: memref<1x128xf32, #tpu.memory_space<vmem>>, %arg4: memref<16x128xf32, #tpu.memory_space<vmem>>) attributes {dimension_semantics = [#tpu.dimension_semantics<parallel>], iteration_bounds = array<i64: 1>, scalar_prefetch = 0 : i64, scratch_operands = 0 : i64, tpu.core_type = #tpu.core_type<tc>, window_params = [{transform_indices = @transform_0, window_bounds = array<i64: 16, 128>}, {pipeline_mode = #tpu.pipeline_mode<synchronous>, transform_indices = @transform_1, window_bounds = array<i64: 1, 128>}, {pipeline_mode = #tpu.pipeline_mode<synchronous>, transform_indices = @transform_2, window_bounds = array<i64: 1, 128>}, {transform_indices = @transform_3, window_bounds = array<i64: 16, 128>}]} {
    %c0 = arith.constant 0 : index
    %c0_0 = arith.constant 0 : index
    %0 = vector.load %arg1[%c0, %c0_0] : memref<16x128xf32, #tpu.memory_space<vmem>>, vector<16x128xf32>
    %c0_1 = arith.constant 0 : index
    %c0_2 = arith.constant 0 : index
    %1 = vector.load %arg2[%c0_1, %c0_2] : memref<1x128xf32, #tpu.memory_space<vmem>>, vector<1x128xf32>
    %2 = vector.broadcast %1 : vector<1x128xf32> to vector<16x128xf32>
    %3 = arith.subf %0, %2 : vector<16x128xf32>
    %c0_3 = arith.constant 0 : index
    %c0_4 = arith.constant 0 : index
    %4 = vector.load %arg3[%c0_3, %c0_4] : memref<1x128xf32, #tpu.memory_space<vmem>>, vector<1x128xf32>
    %5 = vector.broadcast %4 : vector<1x128xf32> to vector<16x128xf32>
    %6 = arith.mulf %3, %5 : vector<16x128xf32>
    %c0_5 = arith.constant 0 : index
    %c0_6 = arith.constant 0 : index
    %7 = vector.load %arg4[%c0_5, %c0_6] : memref<16x128xf32, #tpu.memory_space<vmem>>, vector<16x128xf32>
    tpu.vector_store %arg4[%c0_5, %c0_6], %6 {strides = array<i32>} : memref<16x128xf32, #tpu.memory_space<vmem>>, vector<16x128xf32>,
    return
  }
  func.func @transform_0(%arg0: i32) -> (i32, i32) {
    %c0_i32 = arith.constant 0 : i32
    %c0_i32_0 = arith.constant 0 : i32
    return %arg0, %c0_i32 : i32, i32
  }
  func.func @transform_1(%arg0: i32) -> (i32, i32) {
    %c0_i32 = arith.constant 0 : i32
    %c0_i32_0 = arith.constant 0 : i32
    %c0_i32_1 = arith.constant 0 : i32
    return %c0_i32, %c0_i32_0 : i32, i32
  }
  func.func @transform_2(%arg0: i32) -> (i32, i32) {
    %c0_i32 = arith.constant 0 : i32
    %c0_i32_0 = arith.constant 0 : i32
    %c0_i32_1 = arith.constant 0 : i32
    return %c0_i32, %c0_i32_0 : i32, i32
  }
  func.func @transform_3(%arg0: i32) -> (i32, i32) {
    %c0_i32 = arith.constant 0 : i32
    %c0_i32_0 = arith.constant 0 : i32
    return %arg0, %c0_i32 : i32, i32
  }
}

</mosaic_0001>

<bundles_post_ra>
// kernel: tpu_custom_call.1
= control target key start
LH: loop header
LB: loop body
LE: loop exit
PB: predicated region body
PF: predicated region fallthrough
CT: control target
= control target key end

     0   :  { %8 = vsyncpa [#allocation3], 0  ;;  %s154_s0 = inlined_call_operand.hbm [shape: f32[16,128], index: 0, kind: input, shape index: {}]   ;;  %s155_s1 = inlined_call_operand.vmem [shape: f32[1,128], index: 1, kind: input, shape index: {}]   ;;  %s156_s2 = inlined_call_operand.vmem [shape: f32[1,128], index: 2, kind: input, shape index: {}]   ;;  %s157_s3 = inlined_call_operand.hbm [shape: f32[16,128], index: 3, kind: output, shape index: {}]  }
   0x1   :  { %9 = vsyncpa [#allocation4], 0  ;;  %s118_s12 = smov [#allocation2]  }
   0x2   :  { %s15_s13 = sshll.u32 %s118_s12, 4  ;;  %s16_s13 = int_to_ptr.vmem [resolvable:$true] %s15_s13 }
   0x3   :  { %s82_s14 = scalar_lea.vmem %s16_s13, 256  ;;  %p87_p1 = scmp.lt.s32.totalorder %s16_s13, %s16_s13 }
   0x4   :  { %p83_p0 = scmp.ne.s32.totalorder %s16_s13, %s82_s14  ;;  %p88_p2 = scmp.lt.s32.totalorder %s82_s14, %s82_s14 }
   0x6   :  { %p89_p3 = por %p88_p2, %p87_p1 }
   0x8   :  { %p90_p4 = pnand %p89_p3, %p83_p0 }
   0xa   :  { %93 = shalt.err (!%p90_p4)
}
   0xb   :  { %s119_s15 = smov 128   ;;  %s120_s16 = smov 8  }
   0xc   :  { %21 = dma.hbm_to_vmem [thread:$0]  %s154_s0, 256, %s16_s13, [#allocation3], %s119_s15, %s119_s15, %s120_s16  }
   0xd   :  { %114 = dma.done.wait [#allocation3], 256  }
   0xe   :  { %115 = vsyncadd [#allocation3], 4294967040  ;;  %v29_v0 = vld [vmem:[#allocation2] sm:$0xff]  ;;  %v30_v4 = vld [vmem:[#allocation2 + $0x8] sm:$0xff]  ;;  %s121_s23 = smov [#allocation5]  }
   0xf   :  { %v68_v1 = vld [vmem:[%s155_s1] ss:$0 sm:$0xff]  ;;  %s56_s24 = sshll.u32 %s121_s23, 4  ;;  %s57_s24 = int_to_ptr.vmem [resolvable:$true] %s56_s24 }
  0x10   :  { %v69_v2 = vld [vmem:[%s156_s2] ss:$0 sm:$0xff]  ;;  %v38_v3 = vsub.f32 %v29_v0, %v68_v1  ;;  %v39_v5 = vsub.f32 %v30_v4, %v68_v1  ;;  %s94_s0 = scalar_lea.vmem %s57_s24, 256  ;;  %p99_p6 = scmp.lt.s32.totalorder %s57_s24, %s57_s24 }
  0x11   :  { %p95_p5 = scmp.ne.s32.totalorder %s57_s24, %s94_s0  ;;  %p100_p7 = scmp.lt.s32.totalorder %s94_s0, %s94_s0 }
  0x12   :  { %v47_v6 = vmul.f32 %v69_v2, %v38_v3  ;;  %v48_v7 = vmul.f32 %v69_v2, %v39_v5 }
  0x13   :  { %p101_p8 = por %p100_p7, %p99_p6 }
  0x14   :  { %49 = vst [vmem:[#allocation5] sm:$0xff] %v47_v6  ;;  %50 = vst [vmem:[#allocation5 + $0x8] sm:$0xff] %v48_v7 }
  0x15   :  { %p102_p9 = pnand %p101_p8, %p95_p5 }
  0x17   :  { %105 = shalt.err (!%p102_p9)
}
  0x18   :  { %62 = dma.vmem_to_hbm [thread:$0]  %s57_s24, 256, %s157_s3, [#allocation4], %s119_s15, %s119_s15, %s120_s16  }
  0x19   :  { %116 = dma.done.wait [#allocation4], 256  }
  0x1a   :  { %117 = vsyncadd [#allocation4], 4294967040 }
  0x1b   :  { %66 = vsyncpa [#allocation3], 1 }
  0x1c   :  { %67 = vsyncpa [#allocation4], 1 }

</bundles_post_ra>
